<compile_context>
chip_gen: v6e
topology: v6e:2x2x1
jax: 0.10.0
libtpu: 0.0.40
codegen_flags: <defaults>
</compile_context>

<pallas_src>
import functools
import math

import jax
import jax.numpy as jnp
from jax.experimental import pallas as pl
from jax.experimental.pallas import tpu as pltpu

f32 = jnp.float32
bf16 = jnp.bfloat16

_MIB = 1024 * 1024
_RESIDENT_BUDGET = 12 * _MIB       # conservative: fits v5e's 16 MiB scoped-VMEM default
_VMEM_LIMIT_CAP = 48 * _MIB        # headroom under v7x's 64 MiB physical VMEM


def make_octonion_mul(kernel):
    """JAX port of the octonion 'hamilton' weight construction.

    kernel: (in_features // 8, out_features) -> hamilton: (in_features, out_features)
    """
    a0, a1, a2, a3, a4, a5, a6, a7 = jnp.split(kernel, 8, axis=1)
    rows = [
        [a0,  a1,  a2,  a3,  a4,  a5,  a6,  a7],
        [a1, -a0,  a3, -a2,  a5, -a4, -a7,  a6],
        [a2, -a3, -a0,  a1,  a6,  a7, -a4, -a5],
        [a3,  a2, -a1, -a0,  a7, -a6,  a5, -a4],
        [a4, -a5, -a6, -a7, -a0,  a1,  a2,  a3],
        [a5,  a4, -a7,  a6, -a1, -a0, -a3,  a2],
        [a6,  a7,  a4, -a5, -a2,  a3, -a0, -a1],
        [a7, -a6,  a5,  a4, -a3, -a2,  a1, -a0],
    ]
    hamilton = jnp.concatenate(
        [jnp.concatenate(row, axis=0) for row in rows], axis=1)
    assert kernel.shape[1] == hamilton.shape[1]
    return hamilton


def _round_up(v, m):
    return (v + m - 1) // m * m


def _compiler_params(dimension_semantics, est_bytes):
    kwargs = dict(dimension_semantics=dimension_semantics)
    if est_bytes > _RESIDENT_BUDGET:
        kwargs["vmem_limit_bytes"] = int(min(est_bytes * 3 // 2, _VMEM_LIMIT_CAP))
    return pltpu.CompilerParams(**kwargs)


# ---------------------------------------------------------------------------
# Pass 1: support = x @ hamilton   (row-tiled over i, K-tiled over in_features)
# ---------------------------------------------------------------------------
def _support_kernel(x_ref, ham_ref, sup_ref, acc_ref):
    k = pl.program_id(1)

    @pl.when(k == 0)
    def _():
        acc_ref[...] = jnp.zeros_like(acc_ref)

    acc_ref[...] += jnp.dot(x_ref[...], ham_ref[...],
                            preferred_element_type=jnp.float32)

    @pl.when(k == pl.num_programs(1) - 1)
    def _():
        sup_ref[...] = acc_ref[...].astype(sup_ref.dtype)


# ---------------------------------------------------------------------------
# Pass 2a (support fully VMEM-resident): one dot per row strip, no K axis,
# no scratch accumulator; BN partials (8 identical rows per tile, keeps the
# store sublane-aligned and the row-tile axis "parallel") from the f32 result.
# ---------------------------------------------------------------------------
def _spmm_stats_resident_kernel(adj_ref, sup_ref, pre_ref, psum_ref, psq_ref):
    acc = jnp.dot(adj_ref[...], sup_ref[...], preferred_element_type=jnp.float32)
    pre_ref[...] = acc.astype(pre_ref.dtype)
    tile_sum = jnp.sum(acc, axis=0, keepdims=True)
    tile_sq = jnp.sum(acc * acc, axis=0, keepdims=True)
    psum_ref[...] = jnp.broadcast_to(tile_sum, psum_ref.shape)
    psq_ref[...] = jnp.broadcast_to(tile_sq, psq_ref.shape)


# ---------------------------------------------------------------------------
# Pass 2b (fallback for large working sets): K-tiled over adj columns with an
# f32 scratch accumulator (pre is stored bf16, so the scratch keeps the
# cross-K accumulation and the BN statistics in full precision).
# ---------------------------------------------------------------------------
def _spmm_stats_tiled_kernel(adj_ref, sup_ref, pre_ref, psum_ref, psq_ref, acc_ref):
    k = pl.program_id(1)

    @pl.when(k == 0)
    def _():
        acc_ref[...] = jnp.zeros_like(acc_ref)

    acc_ref[...] += jnp.dot(adj_ref[...], sup_ref[...],
                            preferred_element_type=jnp.float32)

    @pl.when(k == pl.num_programs(1) - 1)
    def _():
        acc = acc_ref[...]
        pre_ref[...] = acc.astype(pre_ref.dtype)
        tile_sum = jnp.sum(acc, axis=0, keepdims=True)
        tile_sq = jnp.sum(acc * acc, axis=0, keepdims=True)
        psum_ref[...] = jnp.broadcast_to(tile_sum, psum_ref.shape)
        psq_ref[...] = jnp.broadcast_to(tile_sq, psq_ref.shape)


# ---------------------------------------------------------------------------
# Tiny grid-less kernel: reduce per-tile partials once, produce BN scale/shift.
# ---------------------------------------------------------------------------
def _bn_scale_shift_kernel(psum_ref, psq_ref, gamma_ref, beta_ref,
                           scale_ref, shift_ref, *, inv_n):
    # Each row tile contributed 8 identical copies of its partial -> divide by 8.
    total_sum = jnp.sum(psum_ref[...], axis=0, keepdims=True) * 0.125
    total_sq = jnp.sum(psq_ref[...], axis=0, keepdims=True) * 0.125
    mean = total_sum * inv_n
    var = jnp.maximum(total_sq * inv_n - mean * mean, 0.0)   # biased variance
    inv_std = jax.lax.rsqrt(var + 1e-5)
    scale = gamma_ref[...] * inv_std
    scale_ref[...] = scale
    shift_ref[...] = beta_ref[...] - mean * scale


# ---------------------------------------------------------------------------
# Pass 3: out = tanh(pre * scale + shift)   (pure FMA + tanh stream)
# ---------------------------------------------------------------------------
def _bn_tanh_kernel(pre_ref, scale_ref, shift_ref, out_ref):
    pre = pre_ref[...].astype(jnp.float32)
    out_ref[...] = jnp.tanh(pre * scale_ref[...] + shift_ref[...]).astype(out_ref.dtype)


def ognn_layer_forward(x, adj, weight, gamma, beta):
    """Forward pass of OGNN_layer.

    x:      (N, in_features)   float32
    adj:    (N, N)             float32 (dense equivalent of the sparse adj)
    weight: (in_features // 8, out_features)
    gamma:  (out_features,)    BatchNorm1d weight
    beta:   (out_features,)    BatchNorm1d bias
    """
    N, in_features = x.shape
    out_features = weight.shape[1]

    # Glue: hamilton matrix (pure parameter rearrangement, stays outside the kernel).
    hamilton = make_octonion_mul(weight)                           # (in, out)

    # --- padded, lane-dense layout ----------------------------------------
    F_pad = _round_up(out_features, 128)          # lane-dense feature axis (unmasked vst)
    TILE = 1024 if F_pad <= 256 else 512          # bigger tiles -> ~85% HBM pipelining eff.
    if N <= TILE:
        n_pad = _round_up(N, 16)                  # bf16 sublane packing
        tm = tk = n_pad
    else:
        n_pad = _round_up(N, TILE)
        tm = tk = TILE
    num_i = n_pad // tm
    num_k = n_pad // tk

    # Pass-1 K tiling over in_features (guards large hamilton blocks).
    if in_features <= 1024:
        tk_in = in_features
        in_pad = in_features
    else:
        tk_in = 512
        in_pad = _round_up(in_features, tk_in)
    num_kin = in_pad // tk_in

    # Cheap padding: cast to bf16 first, then pad (no f32 N^2 round trips).
    x_p = jnp.pad(x.astype(bf16), ((0, n_pad - N), (0, in_pad - in_features)))
    adj_p = jnp.pad(adj.astype(bf16), ((0, n_pad - N), (0, n_pad - N)))
    ham_p = jnp.pad(hamilton.astype(bf16),
                    ((0, in_pad - in_features), (0, F_pad - out_features)))
    gamma_p = jnp.pad(gamma.astype(f32)[None, :], ((0, 0), (0, F_pad - out_features)))
    beta_p = jnp.pad(beta.astype(f32)[None, :], ((0, 0), (0, F_pad - out_features)))

    # --- pass 1: support = x @ hamilton ------------------------------------
    est1 = (2 * tm * tk_in * 2 + 2 * tk_in * F_pad * 2
            + tm * F_pad * 4 + 2 * tm * F_pad * 2)
    support = pl.pallas_call(
        _support_kernel,
        out_shape=jax.ShapeDtypeStruct((n_pad, F_pad), bf16),
        grid=(num_i, num_kin),
        in_specs=[
            pl.BlockSpec((tm, tk_in), lambda i, k: (i, k)),
            pl.BlockSpec((tk_in, F_pad), lambda i, k: (k, 0)),
        ],
        out_specs=pl.BlockSpec((tm, F_pad), lambda i, k: (i, 0)),
        scratch_shapes=[pltpu.VMEM((tm, F_pad), f32)],
        compiler_params=_compiler_params(("parallel", "arbitrary"), est1),
    )(x_p, ham_p)

    # --- pass 2: pre = adj @ support + per-tile BN partials -----------------
    est_resident = (2 * tm * n_pad * 2 + 2 * n_pad * F_pad * 2
                    + 2 * tm * F_pad * 2 + 4 * 8 * F_pad * 4)
    out_shapes2 = (
        jax.ShapeDtypeStruct((n_pad, F_pad), bf16),      # pre (bf16: halves HBM round trip)
        jax.ShapeDtypeStruct((num_i * 8, F_pad), f32),   # partial sums
        jax.ShapeDtypeStruct((num_i * 8, F_pad), f32),   # partial sums of squares
    )
    if est_resident <= _RESIDENT_BUDGET:
        # Support fully VMEM-resident; no K axis; no scratch accumulator.
        pre, psum, psq = pl.pallas_call(
            _spmm_stats_resident_kernel,
            out_shape=out_shapes2,
            grid=(num_i,),
            in_specs=[
                pl.BlockSpec((tm, n_pad), lambda i: (i, 0)),       # adj row strip
                pl.BlockSpec((n_pad, F_pad), lambda i: (0, 0)),    # resident support
            ],
            out_specs=(
                pl.BlockSpec((tm, F_pad), lambda i: (i, 0)),
                pl.BlockSpec((8, F_pad), lambda i: (i, 0)),
                pl.BlockSpec((8, F_pad), lambda i: (i, 0)),
            ),
            compiler_params=_compiler_params(("parallel",), est_resident),
        )(adj_p, support)
    else:
        # K-tiled fallback (support traffic <= adj traffic since tm >= 2*F_pad typically).
        est_tiled = (2 * tm * tk * 2 + 2 * tk * F_pad * 2 + tm * F_pad * 4
                     + 2 * tm * F_pad * 2 + 4 * 8 * F_pad * 4)
        pre, psum, psq = pl.pallas_call(
            _spmm_stats_tiled_kernel,
            out_shape=out_shapes2,
            grid=(num_i, num_k),
            in_specs=[
                pl.BlockSpec((tm, tk), lambda i, k: (i, k)),       # adj tile
                pl.BlockSpec((tk, F_pad), lambda i, k: (k, 0)),    # support tile
            ],
            out_specs=(
                pl.BlockSpec((tm, F_pad), lambda i, k: (i, 0)),
                pl.BlockSpec((8, F_pad), lambda i, k: (i, 0)),
                pl.BlockSpec((8, F_pad), lambda i, k: (i, 0)),
            ),
            scratch_shapes=[pltpu.VMEM((tm, F_pad), f32)],
            compiler_params=_compiler_params(("parallel", "arbitrary"), est_tiled),
        )(adj_p, support)

    # --- BN scale/shift computed once (tiny grid-less kernel) ---------------
    scale, shift = pl.pallas_call(
        functools.partial(_bn_scale_shift_kernel, inv_n=1.0 / N),
        out_shape=(jax.ShapeDtypeStruct((1, F_pad), f32),
                   jax.ShapeDtypeStruct((1, F_pad), f32)),
    )(psum, psq, gamma_p, beta_p)

    # --- pass 3: normalize + tanh (pure mem-bound FMA + EUP tanh stream) ----
    est3 = 2 * tm * F_pad * 2 + 2 * tm * F_pad * 4 + 4 * F_pad * 4
    out_pad = pl.pallas_call(
        _bn_tanh_kernel,
        out_shape=jax.ShapeDtypeStruct((n_pad, F_pad), f32),
        grid=(num_i,),
        in_specs=[
            pl.BlockSpec((tm, F_pad), lambda i: (i, 0)),
            pl.BlockSpec((1, F_pad), lambda i: (0, 0)),
            pl.BlockSpec((1, F_pad), lambda i: (0, 0)),
        ],
        out_specs=pl.BlockSpec((tm, F_pad), lambda i: (i, 0)),
        compiler_params=_compiler_params(("parallel",), est3),
    )(pre, scale, shift)

    return out_pad[:N, :out_features]


if __name__ == "__main__":
    # Small shapes consistent with the module: in/out divisible by 8.
    N = 16             # number of graph nodes (batch for BatchNorm1d)
    in_features = 32
    out_features = 32

    key = jax.random.PRNGKey(0)
    k_x, k_adj, k_w = jax.random.split(key, 3)

    # Node features.
    x = jax.random.normal(k_x, (N, in_features), dtype=jnp.float32)

    # Dense row-normalized adjacency (stand-in for the sparse adj of spmm).
    raw = (jax.random.uniform(k_adj, (N, N)) > 0.7).astype(jnp.float32)
    raw = raw + jnp.eye(N, dtype=jnp.float32)  # self loops
    adj = raw / jnp.sum(raw, axis=1, keepdims=True)

    # Deterministic parameter init matching reset_parameters():
    #   uniform(-stdv, stdv), stdv = sqrt(6 / (in//8 + out))
    stdv = math.sqrt(6.0 / (in_features // 8 + out_features))
    weight = jax.random.uniform(
        k_w, (in_features // 8, out_features),
        minval=-stdv, maxval=stdv, dtype=jnp.float32)

    # BatchNorm1d default init: gamma = 1, beta = 0.
    gamma = jnp.ones((out_features,), dtype=jnp.float32)
    beta = jnp.zeros((out_features,), dtype=jnp.float32)

    out = ognn_layer_forward(x, adj, weight, gamma, beta)
    jax.block_until_ready(out)

    # Sanity: shape, finiteness, and (loose, because the matmuls and the
    # inter-pass tensor run in bf16) agreement with a pure-f32 reference.
    assert out.shape == (N, out_features)
    assert bool(jnp.all(jnp.isfinite(out)))

    hamilton_ref = make_octonion_mul(weight)
    pre_ref = adj @ (x @ hamilton_ref)
    mean_ref = jnp.mean(pre_ref, axis=0, keepdims=True)
    var_ref = jnp.mean((pre_ref - mean_ref) ** 2, axis=0, keepdims=True)
    ref = jnp.tanh((pre_ref - mean_ref) * jax.lax.rsqrt(var_ref + 1e-5) * gamma + beta)
    max_err = float(jnp.max(jnp.abs(out - ref)))
    assert max_err < 0.15, f"max abs error vs f32 reference: {max_err}"

    print("KERNEL_OK")
</pallas_src>

<mosaic_0001>
module attributes {stable_mosaic.version = 11 : i64} {
  func.func @_support_kernel(%arg0: i32, %arg1: i32, %arg2: memref<16x32xbf16, #tpu.memory_space<vmem>>, %arg3: memref<32x128xbf16, #tpu.memory_space<vmem>>, %arg4: memref<16x128xbf16, #tpu.memory_space<vmem>>, %arg5: memref<16x128xf32, #tpu.memory_space<vmem>>) attributes {dimension_semantics = [#tpu.dimension_semantics<parallel>, #tpu.dimension_semantics<arbitrary>], iteration_bounds = array<i64: 1, 1>, scalar_prefetch = 0 : i64, scratch_operands = 1 : i64, tpu.core_type = #tpu.core_type<tc>, window_params = [{transform_indices = @transform_0, window_bounds = array<i64: 16, 32>}, {transform_indices = @transform_1, window_bounds = array<i64: 32, 128>}, {transform_indices = @transform_2, window_bounds = array<i64: 16, 128>}]} {
    %c0_i32 = arith.constant 0 : i32
    %0 = arith.cmpi eq, %arg1, %c0_i32 : i32
    %1 = arith.extui %0 : i1 to i32
    %c0_i32_0 = arith.constant 0 : i32
    %2 = arith.cmpi ne, %1, %c0_i32_0 : i32
    scf.if %2 {
      %cst_10 = arith.constant 0.000000e+00 : f32
      %12 = vector.broadcast %cst_10 : f32 to vector<16x128xf32>
      %c0_11 = arith.constant 0 : index
      %c0_12 = arith.constant 0 : index
      %13 = vector.load %arg5[%c0_11, %c0_12] : memref<16x128xf32, #tpu.memory_space<vmem>>, vector<16x128xf32>
      tpu.vector_store %arg5[%c0_11, %c0_12], %12 {strides = array<i32>} : memref<16x128xf32, #tpu.memory_space<vmem>>, vector<16x128xf32>,
    } else {
    }
    %c0 = arith.constant 0 : index
    %c0_1 = arith.constant 0 : index
    %3 = vector.load %arg5[%c0, %c0_1] : memref<16x128xf32, #tpu.memory_space<vmem>>, vector<16x128xf32>
    %c0_2 = arith.constant 0 : index
    %c0_3 = arith.constant 0 : index
    %4 = vector.load %arg2[%c0_2, %c0_3] : memref<16x32xbf16, #tpu.memory_space<vmem>>, vector<16x32xbf16>
    %c0_4 = arith.constant 0 : index
    %c0_5 = arith.constant 0 : index
    %5 = vector.load %arg3[%c0_4, %c0_5] : memref<32x128xbf16, #tpu.memory_space<vmem>>, vector<32x128xbf16>
    %cst = arith.constant dense<0.000000e+00> : vector<16x128xf32>
    %6 = tpu.matmul %4, %5, %cst {dimension_numbers = #tpu.dot_dimension_numbers<[1], [0], [0], [1], [0, 0, 1, 1], [], []>} : vector<16x32xbf16>, vector<32x128xbf16>, vector<16x128xf32> -> vector<16x128xf32>
    %7 = arith.addf %3, %6 : vector<16x128xf32>
    %c0_6 = arith.constant 0 : index
    %c0_7 = arith.constant 0 : index
    %8 = vector.load %arg5[%c0_6, %c0_7] : memref<16x128xf32, #tpu.memory_space<vmem>>, vector<16x128xf32>
    tpu.vector_store %arg5[%c0_6, %c0_7], %7 {strides = array<i32>} : memref<16x128xf32, #tpu.memory_space<vmem>>, vector<16x128xf32>,
    %c0_i32_8 = arith.constant 0 : i32
    %9 = arith.cmpi eq, %arg1, %c0_i32_8 : i32
    %10 = arith.extui %9 : i1 to i32
    %c0_i32_9 = arith.constant 0 : i32
    %11 = arith.cmpi ne, %10, %c0_i32_9 : i32
    scf.if %11 {
      %c0_10 = arith.constant 0 : index
      %c0_11 = arith.constant 0 : index
      %12 = vector.load %arg5[%c0_10, %c0_11] : memref<16x128xf32, #tpu.memory_space<vmem>>, vector<16x128xf32>
      %13 = arith.truncf %12 : vector<16x128xf32> to vector<16x128xbf16>
      %c0_12 = arith.constant 0 : index
      %c0_13 = arith.constant 0 : index
      %14 = vector.load %arg4[%c0_12, %c0_13] : memref<16x128xbf16, #tpu.memory_space<vmem>>, vector<16x128xbf16>
      tpu.vector_store %arg4[%c0_12, %c0_13], %13 {strides = array<i32>} : memref<16x128xbf16, #tpu.memory_space<vmem>>, vector<16x128xbf16>,
    } else {
    }
    return
  }
  func.func @transform_0(%arg0: i32, %arg1: i32) -> (i32, i32) {
    %c0_i32 = arith.constant 0 : i32
    return %arg0, %arg1 : i32, i32
  }
  func.func @transform_1(%arg0: i32, %arg1: i32) -> (i32, i32) {
    %c0_i32 = arith.constant 0 : i32
    %c0_i32_0 = arith.constant 0 : i32
    return %arg1, %c0_i32 : i32, i32
  }
  func.func @transform_2(%arg0: i32, %arg1: i32) -> (i32, i32) {
    %c0_i32 = arith.constant 0 : i32
    %c0_i32_0 = arith.constant 0 : i32
    return %arg0, %c0_i32 : i32, i32
  }
}

</mosaic_0001>

<bundles_post_ra>
// kernel: tpu_custom_call.1
= control target key start
LH: loop header
LB: loop body
LE: loop exit
PB: predicated region body
PF: predicated region fallthrough
CT: control target
= control target key end

     0   :  { %7 = vsyncpa [#allocation4], 0  ;;  %s294_s0 = inlined_call_operand.hbm [shape: bf16[16,32], index: 0, kind: input, shape index: {}]   ;;  %s295_s1 = inlined_call_operand.hbm [shape: bf16[32,128], index: 1, kind: input, shape index: {}]   ;;  %s296_s2 = inlined_call_operand.hbm [shape: bf16[16,128], index: 2, kind: output, shape index: {}]  }
   0x1   :  { %8 = vsyncpa [#allocation7], 0 }
   0x2   :  { %9 = vsyncpa [#allocation5], 0  ;;  %s254_s9 = smov [#allocation3]  }
   0x3   :  { %s15_s10 = sshll.u32 %s254_s9, 4  ;;  %s16_s10 = int_to_ptr.vmem [resolvable:$true] %s15_s10 }
   0x4   :  { %s196_s11 = scalar_lea.vmem %s16_s10, 128  ;;  %p201_p1 = scmp.lt.s32.totalorder %s16_s10, %s16_s10 }
   0x5   :  { %p197_p0 = scmp.ne.s32.totalorder %s16_s10, %s196_s11  ;;  %p202_p2 = scmp.lt.s32.totalorder %s196_s11, %s196_s11 }
   0x7   :  { %p203_p3 = por %p202_p2, %p201_p1 }
   0x9   :  { %p204_p4 = pnand %p203_p3, %p197_p0 }
   0xb   :  { %207 = shalt.err (!%p204_p4)
}
   0xc   :  { %s255_s12 = smov 64   ;;  %s256_s13 = smov 4  }
   0xd   :  { %21 = dma.hbm_to_vmem [thread:$0]  %s294_s0, 128, %s16_s10, [#allocation4], %s255_s12, %s255_s12, %s256_s13  }
   0xe   :  { %s257_s16 = smov [#allocation6]  }
   0xf   :  { %s27_s17 = sshll.u32 %s257_s16, 4  ;;  %s28_s17 = int_to_ptr.vmem [resolvable:$true] %s27_s17 }
  0x10   :  { %s216_s18 = scalar_lea.vmem %s28_s17, 256  ;;  %p221_p6 = scmp.lt.s32.totalorder %s28_s17, %s28_s17 }
  0x11   :  { %p217_p5 = scmp.ne.s32.totalorder %s28_s17, %s216_s18  ;;  %p222_p7 = scmp.lt.s32.totalorder %s216_s18, %s216_s18 }
  0x13   :  { %p223_p8 = por %p222_p7, %p221_p6 }
  0x15   :  { %p224_p9 = pnand %p223_p8, %p217_p5 }
  0x17   :  { %227 = shalt.err (!%p224_p9)
}
  0x18   :  { %33 = dma.hbm_to_vmem [thread:$0]  %s295_s1, 256, %s28_s17, [#allocation7], %s255_s12, %s255_s12, %s256_s13  }
  0x19   :  { %248 = dma.done.wait [#allocation4], 128  }
  0x1a   :  { %249 = vsyncadd [#allocation4], 4294967168 }
  0x1b   :  { %250 = dma.done.wait [#allocation7], 256  }
  0x1c   :  { %251 = vsyncadd [#allocation7], 4294967040  ;;  %v258_v0 = vmov 0.0   ;;  %vm259_vm0 = vmmov 0   ;;  %v185_v1 = vld [vmem:[#allocation6 + $0x8] sm:$0xff]   ;;  %v186_v2 = vld [vmem:[#allocation6] sm:$0xff]  }
  0x1d   :  { %170 = vmatprep.subr.bf16.mxu0 %v258_v0  ;;  %174 = vmatprep.mubr.msk.bf16.mxu0 %vm259_vm0, %v258_v0  ;;  %v187_v3 = vld [vmem:[#allocation3] sm:$0xff]   ;;  %vm72_vm1 = vcmask 261120   ;;  %s260_s0 = smov [#allocation8]  }
  0x1e   :  { %171 = vmatpush3.bf16.msra.mxu0 %v185_v1  ;;  %s141_s1 = sshll.u32 %s260_s0, 4  ;;  %s142_s1 = int_to_ptr.vmem [resolvable:$true] %s141_s1 }
  0x1f   :  { %172 = vmatprep.subr.bf16.mxu0 %v258_v0  ;;  %s228_s21 = scalar_lea.vmem %s142_s1, 128  ;;  %p233_p11 = scmp.lt.s32.totalorder %s142_s1, %s142_s1 }
  0x20   :  { %p229_p10 = scmp.ne.s32.totalorder %s142_s1, %s228_s21  ;;  %p234_p12 = scmp.lt.s32.totalorder %s228_s21, %s228_s21 }
  0x22   :  { %173 = vmatpush3.bf16.msra.mxu0 %v186_v2  ;;  %p235_p13 = por %p234_p12, %p233_p11 }
  0x24   :  { %p236_p0 = pnand %p235_p13, %p229_p10 }
  0x25   :  { %175 = vmatmul.mubr.msk.bf16.vlgmr.msra.gmra.mxu0 %vm72_vm1, %v187_v3 }
  0xe5   :  { %v110_v4 = vpop.f32.mrf.mxu0 }
  0xe7   :  { %v176_v5 = vpop.f32.mrf.mxu0 }
  0xe9   :  { %v113_v6 = vpop.f32.mrf.mxu0 }
  0xea   :  { %v165_v7 = vpack.c.bf16 %v113_v6, %v110_v4 }
  0xeb   :  { %v177_v8 = vpop.f32.mrf.mxu0 }
  0xec   :  { %166 = vst [vmem:[#allocation8] sm:$0xff] %v165_v7  }
  0xed   :  { %239 = shalt.err (!%p236_p0)
}
  0xee   :  { %147 = dma.vmem_to_hbm [thread:$0]  %s142_s1, 128, %s296_s2, [#allocation5], %s255_s12, %s255_s12, %s256_s13  }
  0xef   :  { %252 = dma.done.wait [#allocation5], 128  }
  0xf0   :  { %253 = vsyncadd [#allocation5], 4294967168 }
  0xf1   :  { %151 = vsyncpa [#allocation4], 1 }
  0xf2   :  { %152 = vsyncpa [#allocation7], 1 }
  0xf3   :  { %153 = vsyncpa [#allocation5], 1 }

</bundles_post_ra>
